<compile_context>
chip_gen: v7x
topology: tpu7x:2x2x1
jax: 0.10.0
libtpu: 0.0.40
codegen_flags: <defaults>
</compile_context>

<pallas_src>
import jax
import jax.numpy as jnp
from jax.experimental import pallas as pl
from jax.experimental.pallas import tpu as pltpu


def _round_up(a, b):
    return ((a + b - 1) // b) * b


def ffn_kernel(x_ref, w1_ref, b1_ref, w2_ref, b2_ref, o_ref, acc_ref):
    # x_ref: (tm, E) bf16   w1_ref: (E, tf) bf16   b1_ref: (1, tf) f32
    # w2_ref: (tf, E) bf16  b2_ref: (1, E) f32
    # o_ref: (tm, E)        acc_ref: (tm, E) f32 scratch (resident over F axis)
    f = pl.program_id(1)

    @pl.when(f == 0)
    def _():
        acc_ref[...] = jnp.zeros_like(acc_ref)

    # First matmul on this F chunk (bf16 -> f32 accumulate), bias + ReLU.
    h = jnp.dot(x_ref[...], w1_ref[...], preferred_element_type=jnp.float32)
    h = jnp.maximum(h + b1_ref[...], 0.0)

    # Second matmul: accumulate this F chunk's contribution to the output tile.
    acc_ref[...] += jnp.dot(h.astype(w2_ref.dtype), w2_ref[...],
                            preferred_element_type=jnp.float32)

    @pl.when(f == pl.num_programs(1) - 1)
    def _():
        o_ref[...] = (acc_ref[...] + b2_ref[...]).astype(o_ref.dtype)


def feed_forward(x, w1, b1, w2, b2, *, tm=256, tf=512, out_dtype=None):
    """Fused FFN: relu(x @ w1 + b1) @ w2 + b2.

    x: (..., E). w1: (E, F), b1: (F,), w2: (F, E), b2: (E,).
    Matmuls run in bf16 on the MXU with f32 accumulation.
    """
    orig_shape = x.shape
    E = orig_shape[-1]
    F = w1.shape[1]
    out_dtype = out_dtype or x.dtype

    x2d = x.reshape(-1, E)
    M = x2d.shape[0]

    # Row tiling: shrink the tile for tiny M, otherwise pad M up to the tile.
    tm_eff = min(tm, _round_up(M, 8))
    M_pad = _round_up(M, tm_eff)

    # Hidden (F) tiling: 128-aligned chunk; pad F so the chunk divides it.
    tf_eff = min(tf, _round_up(F, 128))
    F_pad = _round_up(F, tf_eff)

    # Cast operands for the MXU; zero padding is exact (relu(0)=0, zero rows
    # of W2 contribute nothing, padded x rows are sliced away afterwards).
    x_p = jnp.zeros((M_pad, E), jnp.bfloat16).at[:M].set(x2d.astype(jnp.bfloat16))
    w1_p = jnp.zeros((E, F_pad), jnp.bfloat16).at[:, :F].set(w1.astype(jnp.bfloat16))
    b1_p = jnp.zeros((1, F_pad), jnp.float32).at[:, :F].set(b1.astype(jnp.float32))
    w2_p = jnp.zeros((F_pad, E), jnp.bfloat16).at[:F].set(w2.astype(jnp.bfloat16))
    b2_p = b2.reshape(1, E).astype(jnp.float32)

    grid = (M_pad // tm_eff, F_pad // tf_eff)

    out = pl.pallas_call(
        ffn_kernel,
        out_shape=jax.ShapeDtypeStruct((M_pad, E), out_dtype),
        grid_spec=pltpu.PrefetchScalarGridSpec(
            num_scalar_prefetch=0,
            grid=grid,
            in_specs=[
                pl.BlockSpec((tm_eff, E), lambda i, f: (i, 0)),   # x row tile
                pl.BlockSpec((E, tf_eff), lambda i, f: (0, f)),   # W1 F-chunk
                pl.BlockSpec((1, tf_eff), lambda i, f: (0, f)),   # b1 F-chunk
                pl.BlockSpec((tf_eff, E), lambda i, f: (f, 0)),   # W2 F-chunk
                pl.BlockSpec((1, E),      lambda i, f: (0, 0)),   # b2
            ],
            out_specs=pl.BlockSpec((tm_eff, E), lambda i, f: (i, 0)),
            scratch_shapes=[pltpu.VMEM((tm_eff, E), jnp.float32)],
        ),
        compiler_params=pltpu.CompilerParams(
            dimension_semantics=("parallel", "arbitrary"),
            vmem_limit_bytes=48 * 1024 * 1024,   # fits v7x's 64 MiB with headroom
        ),
    )(x_p, w1_p, b1_p, w2_p, b2_p)

    return out[:M].reshape(orig_shape)


def feed_forward_ref(x, w1, b1, w2, b2):
    h = jnp.maximum(x @ w1 + b1, 0.0)
    return h @ w2 + b2


if __name__ == "__main__":
    # Small shapes consistent with the module's forward: (batch, seq, embed).
    # d_ff chosen > tf so the F-reduction axis (2 chunks) is exercised.
    batch, seq, embed_size, d_ff = 2, 8, 128, 1024

    key = jax.random.PRNGKey(0)
    kx, kw1, kb1, kw2, kb2 = jax.random.split(key, 5)

    x = jax.random.normal(kx, (batch, seq, embed_size), dtype=jnp.float32)

    # Deterministic parameter init (uniform, same bound style as nn.Linear),
    # stored as (in, out) == transpose of PyTorch's (out, in) weight layout.
    bound1 = 1.0 / (embed_size ** 0.5)
    bound2 = 1.0 / (d_ff ** 0.5)
    w1 = jax.random.uniform(kw1, (embed_size, d_ff), jnp.float32, -bound1, bound1)
    b1 = jax.random.uniform(kb1, (d_ff,), jnp.float32, -bound1, bound1)
    w2 = jax.random.uniform(kw2, (d_ff, embed_size), jnp.float32, -bound2, bound2)
    b2 = jax.random.uniform(kb2, (embed_size,), jnp.float32, -bound2, bound2)

    out = feed_forward(x, w1, b1, w2, b2)
    out = jax.block_until_ready(out)

    ref = feed_forward_ref(x, w1, b1, w2, b2)
    assert out.shape == (batch, seq, embed_size)
    max_err = float(jnp.max(jnp.abs(out - ref)))
    assert max_err < 5e-2, f"max abs error too large: {max_err}"

    print("KERNEL_OK")
</pallas_src>

<mosaic_0001>
module attributes {stable_mosaic.version = 11 : i64} {
  func.func @ffn_kernel(%arg0: i32, %arg1: i32, %arg2: memref<16x128xbf16, #tpu.memory_space<vmem>>, %arg3: memref<128x512xbf16, #tpu.memory_space<vmem>>, %arg4: memref<1x512xf32, #tpu.memory_space<vmem>>, %arg5: memref<512x128xbf16, #tpu.memory_space<vmem>>, %arg6: memref<1x128xf32, #tpu.memory_space<vmem>>, %arg7: memref<16x128xf32, #tpu.memory_space<vmem>>, %arg8: memref<16x128xf32, #tpu.memory_space<vmem>>) attributes {dimension_semantics = [#tpu.dimension_semantics<parallel>, #tpu.dimension_semantics<arbitrary>], iteration_bounds = array<i64: 1, 2>, scalar_prefetch = 0 : i64, scratch_operands = 1 : i64, tpu.core_type = #tpu.core_type<tc>, window_params = [{transform_indices = @transform_0, window_bounds = array<i64: 16, 128>}, {transform_indices = @transform_1, window_bounds = array<i64: 128, 512>}, {transform_indices = @transform_2, window_bounds = array<i64: 1, 512>}, {transform_indices = @transform_3, window_bounds = array<i64: 512, 128>}, {pipeline_mode = #tpu.pipeline_mode<synchronous>, transform_indices = @transform_4, window_bounds = array<i64: 1, 128>}, {transform_indices = @transform_5, window_bounds = array<i64: 16, 128>}]} {
    %c0_i32 = arith.constant 0 : i32
    %0 = arith.cmpi eq, %arg1, %c0_i32 : i32
    %1 = arith.extui %0 : i1 to i32
    %c0_i32_0 = arith.constant 0 : i32
    %2 = arith.cmpi ne, %1, %c0_i32_0 : i32
    scf.if %2 {
      %cst_15 = arith.constant 0.000000e+00 : f32
      %20 = vector.broadcast %cst_15 : f32 to vector<16x128xf32>
      %c0_16 = arith.constant 0 : index
      %c0_17 = arith.constant 0 : index
      %21 = vector.load %arg8[%c0_16, %c0_17] : memref<16x128xf32, #tpu.memory_space<vmem>>, vector<16x128xf32>
      tpu.vector_store %arg8[%c0_16, %c0_17], %20 {strides = array<i32>} : memref<16x128xf32, #tpu.memory_space<vmem>>, vector<16x128xf32>,
    } else {
    }
    %c0 = arith.constant 0 : index
    %c0_1 = arith.constant 0 : index
    %3 = vector.load %arg2[%c0, %c0_1] : memref<16x128xbf16, #tpu.memory_space<vmem>>, vector<16x128xbf16>
    %c0_2 = arith.constant 0 : index
    %c0_3 = arith.constant 0 : index
    %4 = vector.load %arg3[%c0_2, %c0_3] : memref<128x512xbf16, #tpu.memory_space<vmem>>, vector<128x512xbf16>
    %cst = arith.constant dense<0.000000e+00> : vector<16x512xf32>
    %5 = tpu.matmul %3, %4, %cst {dimension_numbers = #tpu.dot_dimension_numbers<[1], [0], [0], [1], [0, 0, 1, 1], [], []>} : vector<16x128xbf16>, vector<128x512xbf16>, vector<16x512xf32> -> vector<16x512xf32>
    %c0_4 = arith.constant 0 : index
    %c0_5 = arith.constant 0 : index
    %6 = vector.load %arg4[%c0_4, %c0_5] : memref<1x512xf32, #tpu.memory_space<vmem>>, vector<1x512xf32>
    %7 = vector.broadcast %6 : vector<1x512xf32> to vector<16x512xf32>
    %8 = arith.addf %5, %7 : vector<16x512xf32>
    %cst_6 = arith.constant 0.000000e+00 : f32
    %9 = vector.broadcast %cst_6 : f32 to vector<16x512xf32>
    %10 = arith.maximumf %8, %9 : vector<16x512xf32>
    %c0_7 = arith.constant 0 : index
    %c0_8 = arith.constant 0 : index
    %11 = vector.load %arg8[%c0_7, %c0_8] : memref<16x128xf32, #tpu.memory_space<vmem>>, vector<16x128xf32>
    %12 = arith.truncf %10 : vector<16x512xf32> to vector<16x512xbf16>
    %c0_9 = arith.constant 0 : index
    %c0_10 = arith.constant 0 : index
    %13 = vector.load %arg5[%c0_9, %c0_10] : memref<512x128xbf16, #tpu.memory_space<vmem>>, vector<512x128xbf16>
    %cst_11 = arith.constant dense<0.000000e+00> : vector<16x128xf32>
    %14 = tpu.matmul %12, %13, %cst_11 {dimension_numbers = #tpu.dot_dimension_numbers<[1], [0], [0], [1], [0, 0, 1, 1], [], []>} : vector<16x512xbf16>, vector<512x128xbf16>, vector<16x128xf32> -> vector<16x128xf32>
    %15 = arith.addf %11, %14 : vector<16x128xf32>
    %c0_12 = arith.constant 0 : index
    %c0_13 = arith.constant 0 : index
    %16 = vector.load %arg8[%c0_12, %c0_13] : memref<16x128xf32, #tpu.memory_space<vmem>>, vector<16x128xf32>
    tpu.vector_store %arg8[%c0_12, %c0_13], %15 {strides = array<i32>} : memref<16x128xf32, #tpu.memory_space<vmem>>, vector<16x128xf32>,
    %c1_i32 = arith.constant 1 : i32
    %17 = arith.cmpi eq, %arg1, %c1_i32 : i32
    %18 = arith.extui %17 : i1 to i32
    %c0_i32_14 = arith.constant 0 : i32
    %19 = arith.cmpi ne, %18, %c0_i32_14 : i32
    scf.if %19 {
      %c0_15 = arith.constant 0 : index
      %c0_16 = arith.constant 0 : index
      %20 = vector.load %arg8[%c0_15, %c0_16] : memref<16x128xf32, #tpu.memory_space<vmem>>, vector<16x128xf32>
      %c0_17 = arith.constant 0 : index
      %c0_18 = arith.constant 0 : index
      %21 = vector.load %arg6[%c0_17, %c0_18] : memref<1x128xf32, #tpu.memory_space<vmem>>, vector<1x128xf32>
      %22 = vector.broadcast %21 : vector<1x128xf32> to vector<16x128xf32>
      %23 = arith.addf %20, %22 : vector<16x128xf32>
      %c0_19 = arith.constant 0 : index
      %c0_20 = arith.constant 0 : index
      %24 = vector.load %arg7[%c0_19, %c0_20] : memref<16x128xf32, #tpu.memory_space<vmem>>, vector<16x128xf32>
      tpu.vector_store %arg7[%c0_19, %c0_20], %23 {strides = array<i32>} : memref<16x128xf32, #tpu.memory_space<vmem>>, vector<16x128xf32>,
    } else {
    }
    return
  }
  func.func @transform_0(%arg0: i32, %arg1: i32) -> (i32, i32) {
    %c0_i32 = arith.constant 0 : i32
    %c0_i32_0 = arith.constant 0 : i32
    return %arg0, %c0_i32 : i32, i32
  }
  func.func @transform_1(%arg0: i32, %arg1: i32) -> (i32, i32) {
    %c0_i32 = arith.constant 0 : i32
    %c0_i32_0 = arith.constant 0 : i32
    return %c0_i32, %arg1 : i32, i32
  }
  func.func @transform_2(%arg0: i32, %arg1: i32) -> (i32, i32) {
    %c0_i32 = arith.constant 0 : i32
    %c0_i32_0 = arith.constant 0 : i32
    return %c0_i32, %arg1 : i32, i32
  }
  func.func @transform_3(%arg0: i32, %arg1: i32) -> (i32, i32) {
    %c0_i32 = arith.constant 0 : i32
    %c0_i32_0 = arith.constant 0 : i32
    return %arg1, %c0_i32 : i32, i32
  }
  func.func @transform_4(%arg0: i32, %arg1: i32) -> (i32, i32) {
    %c0_i32 = arith.constant 0 : i32
    %c0_i32_0 = arith.constant 0 : i32
    %c0_i32_1 = arith.constant 0 : i32
    return %c0_i32, %c0_i32_0 : i32, i32
  }
  func.func @transform_5(%arg0: i32, %arg1: i32) -> (i32, i32) {
    %c0_i32 = arith.constant 0 : i32
    %c0_i32_0 = arith.constant 0 : i32
    return %arg0, %c0_i32 : i32, i32
  }
}

</mosaic_0001>

<bundles_post_ra>
// kernel: tpu_custom_call.1
= control target key start
LH: loop header
LB: loop body
LE: loop exit
PB: predicated region body
PF: predicated region fallthrough
CT: control target
= control target key end

     0   :  { %s2076_s0 = inlined_call_operand.hbm [shape: bf16[16,128], index: 0, kind: input, shape index: {}]   ;;  %s2077_s1 = inlined_call_operand.hbm [shape: bf16[128,1024], index: 1, kind: input, shape index: {}]   ;;  %s2078_s2 = inlined_call_operand.hbm [shape: f32[1,1024], index: 2, kind: input, shape index: {}]   ;;  %s2079_s3 = inlined_call_operand.hbm [shape: bf16[1024,128], index: 3, kind: input, shape index: {}]   ;;  %s2080_s4 = inlined_call_operand.vmem [shape: f32[1,128], index: 4, kind: input, shape index: {}]   ;;  %s2081_s5 = inlined_call_operand.hbm [shape: f32[16,128], index: 5, kind: output, shape index: {}]  }
   0x1   :  { %2091 = sst [smem:[#allocation18_spill]] %s2077_s1 }
   0x2   :  { %10 = vsyncpa [#allocation4], 0 }
   0x3   :  { %11 = vsyncpa [#allocation7], 0 }
   0x4   :  { %13 = vsyncpa [#allocation7 + $0x1], 0 }
   0x5   :  { %14 = vsyncpa [#allocation10], 0 }
   0x6   :  { %16 = vsyncpa [#allocation10 + $0x1], 0 }
   0x7   :  { %17 = vsyncpa [#allocation5], 0  ;;  %s1731_s18 = smov 0   ;;  %s1733_s19 = smov 0  }
   0x8   :  { %s1735_s20 = smov 0   ;;  %s1737_s21 = smov 0  }
   0x9   :  { %s1739_s22 = smov 0   ;;  %s1741_s23 = smov 0  }
   0xa LB: > { %s32_s24 = sadd.s32 1, %s1681_s22  ;;  %s68_s25 = sadd.s32 1, %s1673_s20  ;;  %s1685_s23 = sphi %s1741_s23, %s23_s23   ;;  %s1681_s22 = sphi %s1739_s22, %s2113_s22   ;;  %s1677_s21 = sphi %s1737_s21, %s2112_s21   ;;  %s1673_s20 = sphi %s1735_s20, %s2111_s20   ;;  %s1669_s19 = sphi %s1733_s19, %s2110_s19   ;;  %s1665_s18 = sphi %s1731_s18, %s2109_s18  }
   0xb   : > { %p33_p0 = scmp.ge.s32.totalorder %s32_s24, 2  ;;  %p75_p1 = scmp.ne.s32.totalorder %s1673_s20, %s1669_s19 }
   0xc   : > { %p76_p2 = scmp.eq.s32.totalorder %s1685_s23, 0  ;;  %p1335_p4 = scmp.lt.s32.totalorder %s1685_s23, 2 }
   0xd   : > { %s2115_s24 = smov (%p33_p0, %s32_s24), 0  ;;  %s223_s27 = sand.u32 1, %s1685_s23  }
   0xe   : > { %2092 = sst [smem:[#allocation16_spill]] %s2115_s24  ;;  %p77_p3 = por %p76_p2, %p75_p1 }
   0xf   : > { %s65_s26 = ssub.s32 %s1681_s22, %s2115_s24  ;;  %s1773_s28 = sand.u32 1, %s1673_s20  }
  0x10   : > { %p66_p5 = scmp.eq.s32.totalorder %s65_s26, 0  ;;  %s1259_s29 = sshll.u32 %s1681_s22, 8 }
  0x11   : > { %s2082_s6 = sshll.u32 %s1773_s28, 8  ;;  %s2094_s1 = sld [smem:[#allocation18_spill]] }
  0x12   : > { %s1777_s30 = scalar_select %p66_p5, %s1673_s20, %s68_s25  }
  0x13   : > { %p1785_p6 = pnand %p1335_p4, %p77_p3  ;;  %s227_s11 = scalar_lea.vmem [#allocation6], %s2082_s6 }
  0x14   : > { %2093 = sst [smem:[#allocation17_spill]] %s1777_s30  ;;  %s234_s12 = sshll.u32 %s227_s11, 4  ;;  %s1791_s12 = int_to_ptr.vmem [resolvable:$true] %s234_s12 }
  0x15   : > { %s2095_s10 = scalar_select %p1785_p6, 1, 0 }
  0x16   : > { %s1793_s13 = scalar_lea.sflag [#allocation7], %s223_s27  ;;  %p1799_p8 = pneg %p1785_p6 }
  0x17   : > { %s1783_s9 = scalar_lea.hbm %s2094_s1, %s1259_s29  ;;  %s1484_s25 = scalar_lea.hbm %s2094_s1, 8192 }
  0x18   : > { %s1479_s14 = scalar_lea.hbm %s1783_s9, 4096  ;;  %p1485_p11 = scmp.lt.u32.totalorder %s1783_s9, %s2094_s1 }
  0x19   : > { %p1480_p7 = scmp.ne.s32.totalorder %s1783_s9, %s1479_s14  ;;  %p1486_p12 = scmp.lt.u32.totalorder %s1484_s25, %s1479_s14 }
  0x1a   : > { %s2096_s15 = scalar_select %p1799_p8, 1, 0 }
  0x1b   : > { %p1482_p9 = pnand %p1799_p8, %p1480_p7  ;;  %p1487_p13 = por %p1486_p12, %p1485_p11 }
  0x1c   : > { %p1488_p0 = scmp.lt.u32.totalorder %s1479_s14, %s1783_s9 }
  0x1d   : > { %p1483_p10 = pneg %p1482_p9 }
  0x1e   : > { %p1489_p1 = por %p1488_p0, %p1487_p13 }
  0x20   : > { %p1490_p2 = pnand %p1489_p1, %p1483_p10 }
  0x22   : > { %1493 = shalt.err (!%p1490_p2)
}
  0x23   : > { %s1494_s27 = scalar_lea.vmem %s1791_s12, 4096  ;;  %s1687_s7 = smov [#allocation6]  }
  0x24   : > { %p1495_p3 = scmp.ne.s32.totalorder %s1791_s12, %s1494_s27  ;;  %s1499_s8 = sshll.u32 %s1687_s7, 4  ;;  %s1500_s8 = int_to_ptr.vmem [resolvable:$false] %s1499_s8 }
  0x25   : > { %s1501_s11 = scalar_lea.vmem %s1500_s8, 8192  ;;  %p1502_p7 = scmp.lt.s32.totalorder %s1791_s12, %s1500_s8 }
  0x26   : > { %p1497_p4 = pnand %p1495_p3, %p1799_p8  ;;  %p1503_p9 = scmp.lt.s32.totalorder %s1501_s11, %s1494_s27 }
  0x28   : > { %p1498_p5 = pneg %p1497_p4  ;;  %p1504_p11 = por %p1503_p9, %p1502_p7 }
  0x2a   : > { %p1505_p12 = pnand %p1504_p11, %p1498_p5 }
  0x2c   : > { %1508 = shalt.err (!%p1505_p12)
}
  0x2d   : > { %s1688_s14 = smov 512   ;;  %s1689_s16 = smov 256  }
  0x2e   : > { %s1690_s17 = smov 16   ;;  %s1824_s25 = sadd.s32 4294967295, %s1685_s23  }
  0x2f   : > { %1327 = dma.hbm_to_vmem [thread:$0]  (!%p1785_p6), %s1783_s9, 4096, %s1791_s12, %s1793_s13, %s1688_s14, %s1689_s16, %s1690_s17  }
  0x30   : > { %p81_p10 = scmp.ne.s32.totalorder %s1669_s19, %s1665_s18  ;;  %p2084_p13 = scmp.eq.s32.totalorder %s1824_s25, 0 }
  0x31   : > { %p1170_p0 = scmp.ge.s32.totalorder %s1685_s23, 1  ;;  %p191_p1 = scmp.lt.s32.totalorder %s1685_s23, 3 }
  0x32   : > { %p1833_p2 = por %p2084_p13, %p81_p10  ;;  %s1691_s9 = smov [#allocation3]  }
  0x33   : > { %p1837_p3 = pnand %p1170_p0, %p191_p1  ;;  %s206_s12 = sshll.u32 %s1691_s9, 4  ;;  %s1841_s12 = int_to_ptr.vmem [resolvable:$true] %s206_s12 }
  0x34   : > { %s2097_s26 = scalar_select %p1833_p2, 1, 0 }
  0x35   : > { %s2098_s29 = scalar_select %p1837_p3, 1, 0 }
  0x36   : > { %p1320_p4 = pneg %p1837_p3  ;;  %s1176_s18 = sshll.u32 %s1773_s28, 2 }
  0x37   : > { %s1260_s27 = sshll.u32 %s1681_s22, 6  ;;  %s248_s16 = scalar_lea.vmem [#allocation8], %s1176_s18 }
  0x38   : > { %p1849_p5 = pnand %p1320_p4, %p2084_p13  ;;  %s1856_s14 = scalar_lea.hbm %s2078_s2, %s1260_s27 }
  0x39   : > { %s256_s17 = sshll.u32 %s248_s16, 4  ;;  %s1509_s1 = scalar_lea.hbm %s2076_s0, 128  ;;  %s1858_s17 = int_to_ptr.vmem [resolvable:$true] %s256_s17 }
  0x3a   : > { %p1510_p7 = scmp.ne.s32.totalorder %s2076_s0, %s1509_s1  ;;  %p1511_p9 = pneg %p1849_p5 }
  0x3b   : > { %p1516_p10 = scmp.lt.u32.totalorder %s1509_s1, %s2076_s0 }
  0x3c   : > { %p1512_p11 = pnand %p1511_p9, %p1510_p7 }
  0x3e   : > { %p1513_p12 = pneg %p1512_p11 }
  0x40   : > { %p1518_p0 = pnand %p1516_p10, %p1513_p12 }
  0x42   : > { %1521 = shalt.err (!%p1518_p0)
}
  0x43   : > { %s1522_s18 = scalar_lea.vmem %s1841_s12, 128  ;;  %p1530_p2 = scmp.lt.s32.totalorder %s1841_s12, %s1841_s12 }
  0x44   : > { %p1523_p1 = scmp.ne.s32.totalorder %s1841_s12, %s1522_s18  ;;  %p1531_p3 = scmp.lt.s32.totalorder %s1522_s18, %s1522_s18 }
  0x46   : > { %p1525_p4 = pnand %p1523_p1, %p1511_p9  ;;  %p1532_p6 = por %p1531_p3, %p1530_p2 }
  0x48   : > { %p1526_p13 = pneg %p1525_p4 }
  0x4a   : > { %p1533_p8 = pnand %p1532_p6, %p1526_p13 }
  0x4c   : > { %1536 = shalt.err (!%p1533_p8)
}
  0x4d   : > { %s1692_s24 = smov 64   ;;  %s1693_s1 = smov 4  }
  0x4e   : > { %1323 = dma.hbm_to_vmem [thread:$0]  (!%p1849_p5), %s2076_s0, 128, %s1841_s12, [#allocation4], %s1692_s24, %s1692_s24, %s1693_s1  }
  0x4f   : > { %s1537_s27 = scalar_lea.hbm %s1856_s14, 64  ;;  %p2100_p8 = scmp.ne.s32.totalorder %s2096_s15, 0 }
  0x50   : > { %p1538_p6 = scmp.ne.s32.totalorder %s1856_s14, %s1537_s27  ;;  %s1542_s8 = scalar_lea.hbm %s2078_s2, 128 }
  0x51   : > { %p1543_p3 = scmp.lt.u32.totalorder %s1856_s14, %s2078_s2  ;;  %p1544_p7 = scmp.lt.u32.totalorder %s1542_s8, %s1537_s27 }
  0x52   : > { %p1540_p13 = pnand %p1538_p6, %p2100_p8  ;;  %p1546_p11 = scmp.lt.u32.totalorder %s1537_s27, %s1856_s14 }
  0x53   : > { %p1545_p9 = por %p1544_p7, %p1543_p3 }
  0x54   : > { %p1541_p2 = pneg %p1540_p13 }
  0x55   : > { %p1547_p12 = por %p1546_p11, %p1545_p9 }
  0x57   : > { %p1548_p10 = pnand %p1547_p12, %p1541_p2 }
  0x59   : > { %1551 = shalt.err (!%p1548_p10)
}
  0x5a   : > { %s1552_s12 = scalar_lea.vmem %s1858_s17, 64  ;;  %s1694_s7 = smov [#allocation8]  }
  0x5b   : > { %p1553_p5 = scmp.ne.s32.totalorder %s1858_s17, %s1552_s12  ;;  %s1557_s30 = sshll.u32 %s1694_s7, 4  ;;  %s1558_s30 = int_to_ptr.vmem [resolvable:$false] %s1557_s30 }
  0x5c   : > { %s1559_s6 = scalar_lea.vmem %s1558_s30, 128  ;;  %p1560_p4 = scmp.lt.s32.totalorder %s1858_s17, %s1558_s30 }
  0x5d   : > { %p1555_p0 = pnand %p1553_p5, %p2100_p8  ;;  %p1561_p6 = scmp.lt.s32.totalorder %s1559_s6, %s1552_s12 }
  0x5f   : > { %p1556_p1 = pneg %p1555_p0  ;;  %p1562_p13 = por %p1561_p6, %p1560_p4 }
  0x61   : > { %p1563_p3 = pnand %p1562_p13, %p1556_p1 }
  0x63   : > { %1566 = shalt.err (!%p1563_p3)
}
  0x64   : > { %p2101_p2 = scmp.ne.s32.totalorder %s2095_s10, 0  ;;  %s1261_s27 = sshll.u32 %s1681_s22, 12 }
  0x65   : > { %s2102_s16 = sshll.u32 %s1773_s28, 8  ;;  %s1912_s12 = scalar_lea.hbm %s2079_s3, %s1261_s27 }
  0x66   : > { %1330 = dma.hbm_to_vmem [thread:$0]  (!%p2101_p2), %s1856_s14, 64, %s1858_s17, %s1793_s13  }
  0x67   : > { %s267_s9 = scalar_lea.vmem [#allocation9], %s2102_s16  ;;  %s264_s7 = scalar_lea.sflag [#allocation10], %s1773_s28 }
  0x68   : > { %s274_s8 = sshll.u32 %s267_s9, 4  ;;  %s1567_s30 = scalar_lea.hbm %s1912_s12, 4096  ;;  %s1914_s8 = int_to_ptr.vmem [resolvable:$true] %s274_s8 }
  0x69   : > { %p1568_p7 = scmp.ne.s32.totalorder %s1912_s12, %s1567_s30  ;;  %s1572_s17 = scalar_lea.hbm %s2079_s3, 8192 }
  0x6a   : > { %p1573_p12 = scmp.lt.u32.totalorder %s1912_s12, %s2079_s3  ;;  %p1574_p10 = scmp.lt.u32.totalorder %s1572_s17, %s1567_s30 }
  0x6b   : > { %p1570_p9 = pnand %p1568_p7, %p2100_p8  ;;  %p1576_p0 = scmp.lt.u32.totalorder %s1567_s30, %s1912_s12 }
  0x6c   : > { %p1575_p5 = por %p1574_p10, %p1573_p12 }
  0x6d   : > { %p1571_p11 = pneg %p1570_p9 }
  0x6e   : > { %p1577_p1 = por %p1576_p0, %p1575_p5 }
  0x70   : > { %p1578_p4 = pnand %p1577_p1, %p1571_p11 }
  0x72   : > { %1581 = shalt.err (!%p1578_p4)
}
  0x73   : > { %s1582_s27 = scalar_lea.vmem %s1914_s8, 4096  ;;  %s1695_s9 = smov [#allocation9]  }
  0x74   : > { %p1583_p6 = scmp.ne.s32.totalorder %s1914_s8, %s1582_s27  ;;  %s1587_s11 = sshll.u32 %s1695_s9, 4  ;;  %s1588_s11 = int_to_ptr.vmem [resolvable:$false] %s1587_s11 }
  0x75   : > { %s1589_s18 = scalar_lea.vmem %s1588_s11, 8192  ;;  %p1590_p7 = scmp.lt.s32.totalorder %s1914_s8, %s1588_s11 }
  0x76   : > { %p1585_p13 = pnand %p1583_p6, %p2100_p8  ;;  %p1591_p9 = scmp.lt.s32.totalorder %s1589_s18, %s1582_s27 }
  0x78   : > { %p1586_p3 = pneg %p1585_p13  ;;  %p1592_p12 = por %p1591_p9, %p1590_p7 }
  0x7a   : > { %p1593_p10 = pnand %p1592_p12, %p1586_p3 }
  0x7c   : > { %1596 = shalt.err (!%p1593_p10)
}
  0x7d   : > { %1333 = dma.hbm_to_vmem [thread:$0]  (!%p2101_p2), %s1912_s12, 4096, %s1914_s8, %s264_s7, %s1692_s24, %s1692_s24, %s1693_s1  }
  0x7e   : > { %p2103_p8 = scmp.ne.s32.totalorder %s2098_s29, 0 }
  0x7f   : > { %p2104_p11 = scmp.eq.s32.totalorder (!%p2103_p8), %s1824_s25, 0 }
  0x80   : > { %286 = sbr.rel (%p2103_p8) target bundleno = 667 (0x29b), region = 40 }
  0x87   : > { %1648 = dma.done.wait (%p2104_p11), [#allocation4], 128   ;;  %p2105_p5 = pmov %p2104_p11 }
  0x88   : > { %s292_s10 = sand.u32 1, %s1824_s25   ;;  %s294_s15 = sand.u32 1, %s1669_s19  }
  0x89   : > { %1650 = vsyncadd (%p2105_p5), [#allocation4], 4294967168  ;;  %s1184_s30 = sshll.u32 %s294_s15, 8  ;;  %s293_s13 = scalar_lea.sflag [#allocation7], %s292_s10 }
  0x8a   : > { %s1951_s28 = scalar_lea.vmem [#allocation6], %s1184_s30  ;;  %p2106_p0 = scmp.ne.s32.totalorder %s2097_s26, 0 }
  0x8c   : > { %1652 = dma.done.wait (%p2106_p0), %s293_s13, 4160  }
  0x8d   : > { %1654 = vsyncadd (%p2106_p0), %s293_s13, 4294963136  ;;  %s1185_s29 = sshll.u32 %s294_s15, 2  ;;  %s311_s1 = scalar_lea.sflag [#allocation10], %s294_s15 }
  0x8e   : > { %s1957_s24 = scalar_lea.vmem [#allocation8], %s1185_s29  ;;  %s1959_s8 = scalar_lea.vmem [#allocation9], %s1184_s30 }
  0x8f   : > { %1656 = dma.done.wait (%p2106_p0), %s311_s1, 4096  }
  0x90   : > { %1658 = vsyncadd (%p2106_p0), %s311_s1, 4294963200  ;;  %p1187_p2 = scmp.ne.s32.totalorder %s1677_s21, 0 }
  0x91   : > { %v1696_v0 = vmov (!%p1187_p2), 0.0  }
  0x92   : > { %355 = sbr.rel (%p1187_p2) target bundleno = 153 (0x99), region = 60  ;;  %356 = vst [vmem:[#allocation2] sm:$0xff] (!%p1187_p2), %v1696_v0  ;;  %357 = vst [vmem:[#allocation2 + $0x8] sm:$0xff] (!%p1187_p2), %v1696_v0 }
  0x99 PF: > { %v1398_v1 = vld [vmem:[%s1951_s28 + $0x4] ss:$16 sps:$4 sm:$0xff]   ;;  %v1400_v2 = vld [vmem:[%s1951_s28 + $0xc] ss:$16 sps:$4 sm:$0xff]   ;;  %v1697_v3 = vmov 0   ;;  %p1253_p1 = scmp.ne.s32.totalorder %s1677_s21, 1 }
  0x9a   : > { %612 = vmatprep.mubr.bf16.mxu0 %v1697_v3  ;;  %655 = vmatprep.mubr.bf16.mxu1 %v1697_v3  ;;  %v1402_v4 = vld [vmem:[%s1951_s28] ss:$16 sps:$4 sm:$0xff]   ;;  %v1403_v5 = vld [vmem:[%s1951_s28 + $0x8] ss:$16 sps:$4 sm:$0xff]   ;;  %v1404_v6 = vld [vmem:[%s1951_s28 + $0x24] ss:$16 sps:$4 sm:$0xff]   ;;  %v394_v3 = vlaneseq }
  0x9b   : > { %580 = vmatprep.subr.bf16.mxu0 %v1398_v1  ;;  %623 = vmatprep.subr.bf16.mxu1 %v1400_v2  ;;  %v1406_v7 = vld [vmem:[%s1951_s28 + $0x2c] ss:$16 sps:$4 sm:$0xff]   ;;  %v1408_v8 = vld [vmem:[%s1951_s28 + $0x20] ss:$16 sps:$4 sm:$0xff]   ;;  %v1409_v9 = vld [vmem:[%s1951_s28 + $0x28] ss:$16 sps:$4 sm:$0xff]  }
  0x9c   : > { %581 = vmatpush1.bf16.msra.mxu0 %v1402_v4  ;;  %624 = vmatpush1.bf16.msra.mxu1 %v1403_v5  ;;  %v1410_v10 = vld [vmem:[%s1951_s28 + $0x44] ss:$16 sps:$4 sm:$0xff]   ;;  %v1412_v11 = vld [vmem:[%s1951_s28 + $0x4c] ss:$16 sps:$4 sm:$0xff]   ;;  %v1414_v12 = vld [vmem:[%s1951_s28 + $0x40] ss:$16 sps:$4 sm:$0xff]  }
  0x9d   : > { %582 = vmatprep.subr.bf16.mxu0 %v1404_v6  ;;  %625 = vmatprep.subr.bf16.mxu1 %v1406_v7  ;;  %v1415_v13 = vld [vmem:[%s1951_s28 + $0x48] ss:$16 sps:$4 sm:$0xff]   ;;  %v1416_v14 = vld [vmem:[%s1951_s28 + $0x64] ss:$16 sps:$4 sm:$0xff]   ;;  %v1418_v15 = vld [vmem:[%s1951_s28 + $0x6c] ss:$16 sps:$4 sm:$0xff]  }
  0x9e   : > { %v1420_v16 = vld [vmem:[%s1951_s28 + $0x60] ss:$16 sps:$4 sm:$0xff]   ;;  %v1421_v17 = vld [vmem:[%s1951_s28 + $0x68] ss:$16 sps:$4 sm:$0xff]   ;;  %v1422_v18 = vld [vmem:[%s1951_s28 + $0x84] ss:$16 sps:$4 sm:$0xff]  }
  0x9f   : > { %v1424_v19 = vld [vmem:[%s1951_s28 + $0x8c] ss:$16 sps:$4 sm:$0xff]   ;;  %v1426_v20 = vld [vmem:[%s1951_s28 + $0x80] ss:$16 sps:$4 sm:$0xff]   ;;  %v1427_v21 = vld [vmem:[%s1951_s28 + $0x88] ss:$16 sps:$4 sm:$0xff]  }
  0xa0   : > { %583 = vmatpush1.bf16.msra.mxu0 %v1408_v8  ;;  %626 = vmatpush1.bf16.msra.mxu1 %v1409_v9  ;;  %v1428_v22 = vld [vmem:[%s1951_s28 + $0xa4] ss:$16 sps:$4 sm:$0xff]   ;;  %v1430_v23 = vld [vmem:[%s1951_s28 + $0xac] ss:$16 sps:$4 sm:$0xff]   ;;  %v1432_v24 = vld [vmem:[%s1951_s28 + $0xa0] ss:$16 sps:$4 sm:$0xff]  }
  0xa1   : > { %584 = vmatprep.subr.bf16.mxu0 %v1410_v10  ;;  %627 = vmatprep.subr.bf16.mxu1 %v1412_v11  ;;  %v1433_v25 = vld [vmem:[%s1951_s28 + $0xa8] ss:$16 sps:$4 sm:$0xff]   ;;  %v1434_v26 = vld [vmem:[%s1951_s28 + $0xc4] ss:$16 sps:$4 sm:$0xff]   ;;  %v1436_v27 = vld [vmem:[%s1951_s28 + $0xcc] ss:$16 sps:$4 sm:$0xff]  }
  0xa2   : > { %v1438_v28 = vld [vmem:[%s1951_s28 + $0xc0] ss:$16 sps:$4 sm:$0xff]   ;;  %v1439_v29 = vld [vmem:[%s1951_s28 + $0xc8] ss:$16 sps:$4 sm:$0xff]   ;;  %v1440_v30 = vld [vmem:[%s1951_s28 + $0xe4] ss:$16 sps:$4 sm:$0xff]  }
  0xa3   : > { %v1442_v31 = vld [vmem:[%s1951_s28 + $0xec] ss:$16 sps:$4 sm:$0xff]   ;;  %v1444_v32 = vld [vmem:[%s1951_s28 + $0xe0] ss:$16 sps:$4 sm:$0xff]   ;;  %v1445_v33 = vld [vmem:[%s1951_s28 + $0xe8] ss:$16 sps:$4 sm:$0xff]  }
  0xa4   : > { %585 = vmatpush1.bf16.msra.mxu0 %v1414_v12  ;;  %628 = vmatpush1.bf16.msra.mxu1 %v1415_v13  ;;  %v1447_v34 = vld [vmem:[%s1959_s8 + $0x40] sm:$0xff]   ;;  %v1446_v35 = vld [vmem:[#allocation3] sm:$0xff]   ;;  %v1451_v39 = vld [vmem:[%s1959_s8 + $0x48] sm:$0xff]   ;;  %v395_v4 = vshrl.u32 %v394_v3, 7 }
  0xa5   : > { %586 = vmatprep.subr.bf16.mxu0 %v1416_v14  ;;  %629 = vmatprep.subr.bf16.mxu1 %v1418_v15  ;;  %v1448_v36 = vld [vmem:[%s1959_s8 + $0xc0] sm:$0xff]   ;;  %v1452_v40 = vld [vmem:[%s1959_s8 + $0xc8] sm:$0xff]   ;;  %v1455_v43 = vld [vmem:[%s1959_s8 + $0x50] sm:$0xff]  }
  0xa6   : > { %v1449_v37 = vld [vmem:[%s1959_s8] sm:$0xff]   ;;  %v1453_v41 = vld [vmem:[%s1959_s8 + $0x8] sm:$0xff]   ;;  %v1456_v44 = vld [vmem:[%s1959_s8 + $0xd0] sm:$0xff]   ;;  %v396_v5 = vsub.s32 0, %v395_v4  ;;  %v404_v6 = vsub.s32 2, %v395_v4  ;;  %v400_v8 = vsub.s32 1, %v395_v4 }
  0xa7   : > { %v1450_v38 = vld [vmem:[%s1959_s8 + $0x80] sm:$0xff]   ;;  %v1454_v42 = vld [vmem:[%s1959_s8 + $0x88] sm:$0xff]   ;;  %v1457_v45 = vld [vmem:[%s1959_s8 + $0x10] sm:$0xff]   ;;  %v408_v9 = vsub.s32 3, %v395_v4 }
  0xa8   : > { %587 = vmatpush1.bf16.msra.mxu0 %v1420_v16  ;;  %630 = vmatpush1.bf16.msra.mxu1 %v1421_v17  ;;  %v1458_v46 = vld [vmem:[%s1959_s8 + $0x90] sm:$0xff]   ;;  %v1459_v47 = vld [vmem:[%s1959_s8 + $0x58] sm:$0xff]   ;;  %v1463_v51 = vld [vmem:[%s1959_s8 + $0x60] sm:$0xff]  }
  0xa9   : > { %588 = vmatprep.subr.bf16.mxu0 %v1422_v18  ;;  %631 = vmatprep.subr.bf16.mxu1 %v1424_v19  ;;  %v1460_v48 = vld [vmem:[%s1959_s8 + $0xd8] sm:$0xff]   ;;  %v1464_v52 = vld [vmem:[%s1959_s8 + $0xe0] sm:$0xff]   ;;  %v1467_v55 = vld [vmem:[%s1959_s8 + $0x68] sm:$0xff]  }
  0xaa   : > { %v1461_v49 = vld [vmem:[%s1959_s8 + $0x18] sm:$0xff]   ;;  %v1465_v53 = vld [vmem:[%s1959_s8 + $0x20] sm:$0xff]   ;;  %v1468_v56 = vld [vmem:[%s1959_s8 + $0xe8] sm:$0xff]  }
  0xab   : > { %v1462_v50 = vld [vmem:[%s1959_s8 + $0x98] sm:$0xff]   ;;  %v1466_v54 = vld [vmem:[%s1959_s8 + $0xa0] sm:$0xff]   ;;  %v1469_v57 = vld [vmem:[%s1959_s8 + $0x28] sm:$0xff]  }
  0xac   : > { %589 = vmatpush1.bf16.msra.mxu0 %v1426_v20  ;;  %632 = vmatpush1.bf16.msra.mxu1 %v1427_v21  ;;  %v1470_v58 = vld [vmem:[%s1959_s8 + $0xa8] sm:$0xff]   ;;  %v1471_v59 = vld [vmem:[%s1959_s8 + $0x70] sm:$0xff]   ;;  %v1475_v63 = vld [vmem:[%s1959_s8 + $0x78] sm:$0xff]  }
  0xad   : > { %590 = vmatprep.subr.bf16.mxu0 %v1428_v22  ;;  %633 = vmatprep.subr.bf16.mxu1 %v1430_v23  ;;  %v1472_v60 = vld [vmem:[%s1959_s8 + $0xf0] sm:$0xff]   ;;  %v1476_v0 = vld [vmem:[%s1959_s8 + $0xf8] sm:$0xff]  }
  0xae   : > { %v1473_v61 = vld [vmem:[%s1959_s8 + $0x30] sm:$0xff]   ;;  %v1477_v1 = vld [vmem:[%s1959_s8 + $0x38] sm:$0xff]  }
  0xaf   : > { %v1474_v62 = vld [vmem:[%s1959_s8 + $0xb0] sm:$0xff]   ;;  %v1478_v2 = vld [vmem:[%s1959_s8 + $0xb8] sm:$0xff]  }
  0xb0   : > { %591 = vmatpush1.bf16.msra.mxu0 %v1432_v24  ;;  %634 = vmatpush1.bf16.msra.mxu1 %v1433_v25  ;;  %v392_v7 = vld [vmem:[%s1957_s24] sm:$0xf] }
  0xb1   : > { %592 = vmatprep.subr.bf16.mxu0 %v1434_v26  ;;  %635 = vmatprep.subr.bf16.mxu1 %v1436_v27  ;;  %v397_v10 = vrot.slane %v392_v7, %v396_v5  ;;  %v405_v11 = vrot.slane %v392_v7, %v404_v6  ;;  %v401_v12 = vrot.slane %v392_v7, %v400_v8 }
  0xb2   : > { %v409_v13 = vrot.slane %v392_v7, %v408_v9 }
  0xb4   : > { %593 = vmatpush1.bf16.msra.mxu0 %v1438_v28  ;;  %636 = vmatpush1.bf16.msra.mxu1 %v1439_v29 }
  0xb5   : > { %594 = vmatprep.subr.bf16.mxu0 %v1440_v30  ;;  %637 = vmatprep.subr.bf16.mxu1 %v1442_v31 }
  0xb8   : > { %595 = vmatpush1.bf16.msra.mxu0 %v1444_v32  ;;  %638 = vmatpush1.bf16.msra.mxu1 %v1445_v33 }
  0xb9   : > { %1262 = vmatprep.subr.bf16.mxu0 %v1447_v34  ;;  %1284 = vmatprep.subr.bf16.mxu1 %v1448_v36 }
  0xbb   : > { %613 = vmatmul.mubr.bf16.vlgmr.msra.gmra.mrb[0].mxu0 %v1446_v35  ;;  %656 = vmatmul.mubr.bf16.vlgmr.msra.gmra.mrb[0].mxu1 %v1446_v35 }
  0xbc   : > { %1263 = vmatpush3.bf16.msra.mxu0 %v1449_v37  ;;  %1285 = vmatpush3.bf16.msra.mxu1 %v1450_v38 }
  0xbd   : > { %1264 = vmatprep.subr.bf16.mxu0 %v1451_v39  ;;  %1286 = vmatprep.subr.bf16.mxu1 %v1452_v40 }
  0xc0   : > { %1265 = vmatpush3.bf16.msra.mxu0 %v1453_v41  ;;  %1287 = vmatpush3.bf16.msra.mxu1 %v1454_v42 }
  0xc1   : > { %1266 = vmatprep.subr.bf16.mxu0 %v1455_v43  ;;  %1288 = vmatprep.subr.bf16.mxu1 %v1456_v44 }
  0xc4   : > { %1267 = vmatpush3.bf16.msra.mxu0 %v1457_v45  ;;  %1289 = vmatpush3.bf16.msra.mxu1 %v1458_v46 }
  0xc5   : > { %1268 = vmatprep.subr.bf16.mxu0 %v1459_v47  ;;  %1290 = vmatprep.subr.bf16.mxu1 %v1460_v48 }
  0xc8   : > { %1269 = vmatpush3.bf16.msra.mxu0 %v1461_v49  ;;  %1291 = vmatpush3.bf16.msra.mxu1 %v1462_v50  ;;  %v674_v50 = vld [vmem:[#allocation2] sm:$0xff] }
  0xc9   : > { %1270 = vmatprep.subr.bf16.mxu0 %v1463_v51  ;;  %1292 = vmatprep.subr.bf16.mxu1 %v1464_v52 }
  0xcc   : > { %1271 = vmatpush3.bf16.msra.mxu0 %v1465_v53  ;;  %1293 = vmatpush3.bf16.msra.mxu1 %v1466_v54 }
  0xcd   : > { %1272 = vmatprep.subr.bf16.mxu0 %v1467_v55  ;;  %1294 = vmatprep.subr.bf16.mxu1 %v1468_v56  ;;  %v675_v56 = vld [vmem:[#allocation2 + $0x8] sm:$0xff] }
  0xd0   : > { %1273 = vmatpush3.bf16.msra.mxu0 %v1469_v57  ;;  %1295 = vmatpush3.bf16.msra.mxu1 %v1470_v58 }
  0xd1   : > { %1274 = vmatprep.subr.bf16.mxu0 %v1471_v59  ;;  %1296 = vmatprep.subr.bf16.mxu1 %v1472_v60 }
  0xd4   : > { %1275 = vmatpush3.bf16.msra.mxu0 %v1473_v61  ;;  %1297 = vmatpush3.bf16.msra.mxu1 %v1474_v62  ;;  %v1254_v61 = vld [vmem:[%s2080_s4] ss:$0 sm:$0xff] (!%p1253_p1) }
  0xd5   : > { %1276 = vmatprep.subr.bf16.mxu0 %v1475_v63  ;;  %1298 = vmatprep.subr.bf16.mxu1 %v1476_v0 }
  0xd8   : > { %1277 = vmatpush3.bf16.msra.mxu0 %v1477_v1  ;;  %1299 = vmatpush3.bf16.msra.mxu1 %v1478_v2 }
 0x18e   : > { %v614_v14 = vpop.f32.mrb[0].mxu0  ;;  %v657_v15 = vpop.f32.mrb[0].mxu1 }
 0x18f   : > { %v615_v16 = vadd.f32 %v614_v14, %v397_v10  ;;  %v658_v17 = vadd.f32 %v657_v15, %v405_v11  ;;  %v616_v18 = vpop.f32.mrb[1].mxu0  ;;  %v659_v19 = vpop.f32.mrb[1].mxu1 }
 0x190   : > { %v617_v20 = vadd.f32 %v616_v18, %v401_v12  ;;  %v660_v21 = vadd.f32 %v659_v19, %v409_v13  ;;  %v618_v22 = vpop.f32.mrb[2].mxu0  ;;  %v661_v23 = vpop.f32.mrb[2].mxu1 }
 0x191   : > { %v619_v24 = vadd.f32 %v618_v22, %v397_v10  ;;  %v662_v25 = vadd.f32 %v661_v23, %v405_v11  ;;  %v620_v26 = vpop.f32.mrb[3].mxu0  ;;  %v663_v27 = vpop.f32.mrb[3].mxu1  ;;  %v666_v30 = vmax.f32 %v615_v16, 0.0  ;;  %v668_v31 = vmax.f32 %v658_v17, 0.0 }
 0x192   : > { %v621_v28 = vadd.f32 %v620_v26, %v401_v12  ;;  %v664_v29 = vadd.f32 %v663_v27, %v409_v13  ;;  %v667_v34 = vmax.f32 %v617_v20, 0.0  ;;  %v669_v35 = vmax.f32 %v660_v21, 0.0 }
 0x193   : > { %v670_v32 = vmax.f32 %v619_v24, 0.0  ;;  %v672_v33 = vmax.f32 %v662_v25, 0.0 }
 0x194   : > { %v671_v36 = vmax.f32 %v621_v28, 0.0  ;;  %v673_v37 = vmax.f32 %v664_v29, 0.0 }
 0x195   : > { %v676_v38 = vpack.c.bf16 %v670_v32, %v666_v30  ;;  %v678_v39 = vpack.c.bf16 %v672_v33, %v668_v31 }
 0x196   : > { %v677_v40 = vpack.c.bf16 %v671_v36, %v667_v34  ;;  %v679_v41 = vpack.c.bf16 %v673_v37, %v669_v35 }
 0x198   : > { %968 = vmatprep.mubr.bf16.mxu0 %v677_v40  ;;  %1009 = vmatprep.mubr.bf16.mxu1 %v679_v41 }
 0x199   : > { %969 = vmatmul.mubr.bf16.vlgmr.msra.gmra.mrb[4].mxu0 %v676_v38  ;;  %1010 = vmatmul.mubr.bf16.vlgmr.msra.gmra.mrb[4].mxu1 %v678_v39 }
 0x26c   : > { %v1278_v42 = vpop.f32.mrb[4].mxu0  ;;  %v1300_v43 = vpop.f32.mrb[4].mxu1 }
 0x26d   : > { %v1279_v44 = vpop.f32.mrb[5].mxu0  ;;  %v1301_v45 = vpop.f32.mrb[5].mxu1 }
 0x26e   : > { %v1280_v46 = vadd.f32 %v1279_v44, %v1278_v42  ;;  %v1302_v47 = vadd.f32 %v1301_v45, %v1300_v43  ;;  %v1281_v48 = vpop.f32.mrb[6].mxu0  ;;  %v1303_v49 = vpop.f32.mrb[6].mxu1 }
 0x26f   : > { %v1282_v51 = vpop.f32.mrb[7].mxu0  ;;  %v1304_v52 = vpop.f32.mrb[7].mxu1 }
 0x270   : > { %v1012_v53 = vadd.f32 %v1302_v47, %v1280_v46  ;;  %v1283_v54 = vadd.f32 %v1282_v51, %v1281_v48  ;;  %v1305_v55 = vadd.f32 %v1304_v52, %v1303_v49  ;;  %1025 = sbr.rel (%p1253_p1) target bundleno = 641 (0x281), region = 64 }
 0x272   : > { %v1018_v57 = vadd.f32 %v1012_v53, %v674_v50  ;;  %v1015_v58 = vadd.f32 %v1305_v55, %v1283_v54 }
 0x274   : > { %1020 = vst [vmem:[#allocation2] sm:$0xff] %v1018_v57  ;;  %v1019_v59 = vadd.f32 %v1015_v58, %v675_v56 }
 0x276   : > { %1021 = vst [vmem:[#allocation2 + $0x8] sm:$0xff] %v1019_v59 }
 0x27b   : > { %v1026_v60 = vld [vmem:[#allocation2] sm:$0xff] }
 0x27c   : > { %v1035_v63 = vadd.f32 %v1254_v61, %v1026_v60 }
 0x27d   : > { %v1027_v62 = vld [vmem:[#allocation2 + $0x8] sm:$0xff] }
 0x27e   : > { %v1036_v0 = vadd.f32 %v1254_v61, %v1027_v62  ;;  %1037 = vst [vmem:[#allocation11] sm:$0xff] %v1035_v63 }
 0x280   : > { %1038 = vst [vmem:[#allocation11 + $0x8] sm:$0xff] %v1036_v0 }
 0x281 PF: > { %p1337_p4 = scmp.eq.s32.totalorder %s1824_s25, 1  ;;  %s1698_s7 = smov [#allocation11]  }
 0x282   : > { %s1048_s14 = sshll.u32 %s1698_s7, 4  ;;  %s1049_s14 = int_to_ptr.vmem [resolvable:$true] %s1048_s14 }
 0x283   : > { %s1597_s17 = scalar_lea.vmem %s1049_s14, 256  ;;  %p1604_p7 = scmp.lt.s32.totalorder %s1049_s14, %s1049_s14 }
 0x284   : > { %p1598_p6 = scmp.ne.s32.totalorder %s1049_s14, %s1597_s17  ;;  %p1605_p9 = scmp.lt.s32.totalorder %s1597_s17, %s1597_s17 }
 0x286   : > { %p1599_p13 = pnand %p1598_p6, %p1337_p4  ;;  %p1606_p12 = por %p1605_p9, %p1604_p7 }
 0x288   : > { %p1600_p3 = pneg %p1599_p13 }
 0x28a   : > { %p1607_p10 = pnand %p1606_p12, %p1600_p3 }
 0x28c   : > { %1610 = shalt.err (!%p1607_p10)
}
 0x28d   : > { %s1611_s16 = scalar_lea.hbm %s2081_s5, 256 }
 0x28e   : > { %p1612_p8 = scmp.ne.s32.totalorder %s2081_s5, %s1611_s16  ;;  %p1617_p0 = scmp.lt.u32.totalorder %s1611_s16, %s2081_s5 }
 0x290   : > { %p1613_p11 = pnand %p1612_p8, %p1337_p4 }
 0x292   : > { %p1614_p5 = pneg %p1613_p11 }
 0x294   : > { %p1619_p2 = pnand %p1617_p0, %p1614_p5 }
 0x296   : > { %1622 = shalt.err (!%p1619_p2)
}
 0x297   : > { %s1699_s10 = smov 128   ;;  %s1700_s15 = smov 8  }
 0x298   : > { %1317 = dma.vmem_to_hbm [thread:$0]  (%p1337_p4), %s1049_s14, 256, %s2081_s5, [#allocation5], %s1699_s10, %s1699_s10, %s1700_s15  }
 0x299   : > { %1660 = dma.done.wait (%p1337_p4), [#allocation5], 256  }
 0x29a   : > { %1662 = vsyncadd (%p1337_p4), [#allocation5], 4294967040 }
 0x29b PF: > { %s23_s23 = sadd.s32 1, %s1685_s23   ;;  %s2107_s28 = sld [smem:[#allocation17_spill]] }
 0x29c   : > { %p20_p1 = scmp.ge.s32.totalorder %s23_s23, 4   ;;  %s2108_s29 = sld [smem:[#allocation16_spill]] }
 0x29d   : > { %s2109_s18 = smov %s1669_s19  ;;  %s2110_s19 = smov %s1673_s20 }
 0x29e   : > { %s2112_s21 = smov %s1681_s22  ;;  %22 = sbr.rel (!%p20_p1) target bundleno = 10 (0xa), region = 116 }
 0x2a1   : > { %s2111_s20 = smov %s2107_s28 }
 0x2a2   : > { %s2113_s22 = smov %s2108_s29 }
 0x2a5   :  { %1064 = vsyncpa [#allocation4], 1 }
 0x2a6   :  { %1066 = vsyncpa [#allocation4 + $0x1], 1 }
 0x2a7   :  { %1067 = vsyncpa [#allocation7], 1 }
 0x2a8   :  { %1069 = vsyncpa [#allocation7 + $0x1], 1 }
 0x2a9   :  { %1070 = vsyncpa [#allocation10], 1 }
 0x2aa   :  { %1072 = vsyncpa [#allocation10 + $0x1], 1 }
 0x2ab   :  { %1073 = vsyncpa [#allocation5], 1 }
 0x2ac   :  { %1075 = vsyncpa [#allocation5 + $0x1], 1 }

</bundles_post_ra>
